<compile_context>
chip_gen: v7x
topology: tpu7x:2x2x1
jax: 0.10.0
libtpu: 0.0.40
codegen_flags: <defaults>
</compile_context>

<pallas_src>
import jax
import jax.numpy as jnp
import numpy as np
from jax.experimental import pallas as pl
from jax.experimental.pallas import tpu as pltpu


def skipblocku_kernel(x_ref, w_ref, d_ref, o_ref):
    # x_ref: (TB, Ci*K)  w_ref: (Ci*K, Co*K)  d_ref: (1, Co*K)  o_ref: (TB, Co*K)
    acc = jnp.dot(x_ref[...], w_ref[...], preferred_element_type=jnp.float32)
    o_ref[...] = (acc + d_ref[...]).astype(o_ref.dtype)


def _round_up(n, m):
    return ((n + m - 1) // m) * m


def skipblocku_forward(x, params, *, batch_tile=512):
    """x: (B, Ci, 3) float32.  params: dict of SkipBlockU parameters."""
    B, Ci, K = x.shape
    phi = params["phi"]                     # (Co, Ci)
    Co = phi.shape[0]
    W1, b1 = params["W1"], params["b1"]     # l1: (H, Ci), (H,)
    W2, b2 = params["W2"], params["b2"]     # l2: (Co, H), (Co,)
    W3, b3 = params["W3"], params["b3"]     # l3: (C, 3), (C,)
    W4, b4 = params["W4"], params["b4"]     # l4: (3, C), (3,)
    w = params["weights"].reshape(-1)
    w0, w1s = w[0], w[1]

    # ---- fold the activation-free affine chain (wrapper-side, tiny) ----------
    # l4(l3(v)) = v @ M + c   (applied along the last dim of size K=3)
    M = W3.T @ W4.T                                         # (K, K)
    c = b3 @ W4.T + b4                                      # (K,)
    Mp = (1.0 - w1s) * M + w1s * jnp.eye(K, dtype=x.dtype)  # with skip-to-x blend
    cp = (1.0 - w1s) * c
    # l2(l1(.)) along channels:  Weff @ y + beff
    Weff = W2 @ W1                                          # (Co, Ci)
    beff = W2 @ b1 + b2                                     # (Co,)
    A = (1.0 - w0) * Weff                                   # final-skip scaled

    # out[b,o,k] = sum_{c,j} x[b,c,j] * (A[o,c]*Mp[j,k] + d_{jk}*w0*phi[o,c])
    #              + cp[k]*rowsum(A)[o] + (1-w0)*beff[o]
    W4d = (A.T[:, None, :, None] * Mp[None, :, None, :]
           + (w0 * phi.T)[:, None, :, None]
           * jnp.eye(K, dtype=x.dtype)[None, :, None, :])   # (Ci, K, Co, K)
    Wflat = W4d.reshape(Ci * K, Co * K)
    Dflat = (cp[None, :] * jnp.sum(A, axis=1)[:, None]
             + (1.0 - w0) * beff[:, None]).reshape(1, Co * K)
    # (keep f32; could cast Wflat / x to bf16 with f32 accumulation if accuracy
    #  permits for large Ci/Co — not needed at these sizes.)

    # ---- batch-fused, lane-dense kernel call ---------------------------------
    x_flat = x.reshape(B, Ci * K)           # free reshape (row-major contiguous)
    TB = min(batch_tile, _round_up(B, 8))   # sublane-aligned batch tile
    B_pad = _round_up(B, TB)
    if B_pad != B:
        x_flat = jnp.pad(x_flat, ((0, B_pad - B), (0, 0)))
    nb = B_pad // TB

    cost = pl.CostEstimate(
        flops=2 * B_pad * (Ci * K) * (Co * K),
        transcendentals=0,
        bytes_accessed=4 * (B_pad * Ci * K + Ci * K * Co * K
                            + Co * K + B_pad * Co * K),
    )

    out_flat = pl.pallas_call(
        skipblocku_kernel,
        out_shape=jax.ShapeDtypeStruct((B_pad, Co * K), jnp.float32),
        grid=(nb,),
        in_specs=[
            pl.BlockSpec((TB, Ci * K), lambda i: (i, 0)),        # x (batch tile)
            pl.BlockSpec((Ci * K, Co * K), lambda i: (0, 0)),    # fused weights
            pl.BlockSpec((1, Co * K), lambda i: (0, 0)),         # fused bias
        ],
        out_specs=pl.BlockSpec((TB, Co * K), lambda i: (i, 0)),
        compiler_params=pltpu.CompilerParams(
            dimension_semantics=("parallel",)),
        cost_estimate=cost,
    )(x_flat, Wflat, Dflat)

    return out_flat[:B].reshape(B, Co, K)


def reference_forward(x, params):
    """Pure-JAX transcription of the PyTorch SkipBlockU forward (default cfg)."""
    phi = params["phi"]
    W1, b1 = params["W1"], params["b1"]
    W2, b2 = params["W2"], params["b2"]
    W3, b3 = params["W3"], params["b3"]
    W4, b4 = params["W4"], params["b4"]
    w = params["weights"].reshape(-1)
    y = x @ W3.T + b3                                # l3  (B, Ci, C)
    y = y @ W4.T + b4                                # l4  (B, Ci, 3)
    y = (1.0 - w[1]) * y + w[1] * x                  # Skip >= 2 blend with x
    y = jnp.transpose(y, (0, 2, 1))                  # (B, 3, Ci)
    y = y @ W1.T + b1                                # l1  (B, 3, H)
    y = y @ W2.T + b2                                # l2  (B, 3, Co)
    y = jnp.transpose(y, (0, 2, 1))                  # (B, Co, 3)
    z = jnp.einsum("oc,bck->bok", phi, x)
    return (1.0 - w[0]) * y + w[0] * z


def xavier_uniform(key, shape):
    fan_out, fan_in = shape
    limit = float(np.sqrt(6.0 / (fan_in + fan_out)))
    return jax.random.uniform(key, shape, jnp.float32, -limit, limit)


def linear_bias(key, fan_in, n):
    bound = 1.0 / float(np.sqrt(fan_in))
    return jax.random.uniform(key, (n,), jnp.float32, -bound, bound)


if __name__ == "__main__":
    B, Ci, Co, H, C, K = 12, 16, 16, 32, 8, 3   # batch, in_ch, out_ch, hidden, conv_size, d
    prior_coef = 0.5

    key = jax.random.PRNGKey(0)
    keys = jax.random.split(key, 10)

    params = {
        "phi": jax.random.normal(keys[0], (Co, Ci), jnp.float32) / np.sqrt(Ci),
        "W1": xavier_uniform(keys[1], (H, Ci)),
        "b1": linear_bias(keys[2], Ci, H),
        "W2": xavier_uniform(keys[3], (Co, H)),
        "b2": linear_bias(keys[4], H, Co),
        "W3": xavier_uniform(keys[5], (C, K)),
        "b3": linear_bias(keys[6], K, C),
        "W4": xavier_uniform(keys[7], (K, C)),
        "b4": linear_bias(keys[8], C, K),
        "weights": jnp.full((2, 1), prior_coef, jnp.float32),  # nn.init.constant_
    }
    x = jax.random.normal(keys[9], (B, Ci, K), jnp.float32)

    out = skipblocku_forward(x, params)
    out = jax.block_until_ready(out)

    ref = reference_forward(x, params)
    np.testing.assert_allclose(np.asarray(out), np.asarray(ref),
                               rtol=1e-4, atol=1e-5)
    print("KERNEL_OK")
</pallas_src>

<mosaic_0001>
module attributes {stable_mosaic.version = 11 : i64} {
  func.func @skipblocku_kernel(%arg0: i32, %arg1: memref<16x48xf32, #tpu.memory_space<vmem>>, %arg2: memref<48x48xf32, #tpu.memory_space<vmem>>, %arg3: memref<1x48xf32, #tpu.memory_space<vmem>>, %arg4: memref<16x48xf32, #tpu.memory_space<vmem>>) attributes {dimension_semantics = [#tpu.dimension_semantics<parallel>], iteration_bounds = array<i64: 1>, scalar_prefetch = 0 : i64, scratch_operands = 0 : i64, tpu.core_type = #tpu.core_type<tc>, window_params = [{transform_indices = @transform_0, window_bounds = array<i64: 16, 48>}, {pipeline_mode = #tpu.pipeline_mode<synchronous>, transform_indices = @transform_1, window_bounds = array<i64: 48, 48>}, {pipeline_mode = #tpu.pipeline_mode<synchronous>, transform_indices = @transform_2, window_bounds = array<i64: 1, 48>}, {transform_indices = @transform_3, window_bounds = array<i64: 16, 48>}]} {
    %c0 = arith.constant 0 : index
    %c0_0 = arith.constant 0 : index
    %0 = vector.load %arg1[%c0, %c0_0] : memref<16x48xf32, #tpu.memory_space<vmem>>, vector<16x48xf32>
    %c0_1 = arith.constant 0 : index
    %c0_2 = arith.constant 0 : index
    %1 = vector.load %arg2[%c0_1, %c0_2] : memref<48x48xf32, #tpu.memory_space<vmem>>, vector<48x48xf32>
    %cst = arith.constant dense<0.000000e+00> : vector<16x48xf32>
    %2 = tpu.matmul %0, %1, %cst {dimension_numbers = #tpu.dot_dimension_numbers<[1], [0], [0], [1], [0, 0, 1, 1], [], []>} : vector<16x48xf32>, vector<48x48xf32>, vector<16x48xf32> -> vector<16x48xf32>
    %c0_3 = arith.constant 0 : index
    %c0_4 = arith.constant 0 : index
    %3 = vector.load %arg3[%c0_3, %c0_4] : memref<1x48xf32, #tpu.memory_space<vmem>>, vector<1x48xf32>
    %4 = vector.broadcast %3 : vector<1x48xf32> to vector<16x48xf32>
    %5 = arith.addf %2, %4 : vector<16x48xf32>
    %c0_5 = arith.constant 0 : index
    %c0_6 = arith.constant 0 : index
    %6 = vector.load %arg4[%c0_5, %c0_6] : memref<16x48xf32, #tpu.memory_space<vmem>>, vector<16x48xf32>
    tpu.vector_store %arg4[%c0_5, %c0_6], %5 {strides = array<i32>} : memref<16x48xf32, #tpu.memory_space<vmem>>, vector<16x48xf32>,
    return
  }
  func.func @transform_0(%arg0: i32) -> (i32, i32) {
    %c0_i32 = arith.constant 0 : i32
    %c0_i32_0 = arith.constant 0 : i32
    return %arg0, %c0_i32 : i32, i32
  }
  func.func @transform_1(%arg0: i32) -> (i32, i32) {
    %c0_i32 = arith.constant 0 : i32
    %c0_i32_0 = arith.constant 0 : i32
    %c0_i32_1 = arith.constant 0 : i32
    return %c0_i32, %c0_i32_0 : i32, i32
  }
  func.func @transform_2(%arg0: i32) -> (i32, i32) {
    %c0_i32 = arith.constant 0 : i32
    %c0_i32_0 = arith.constant 0 : i32
    %c0_i32_1 = arith.constant 0 : i32
    return %c0_i32, %c0_i32_0 : i32, i32
  }
  func.func @transform_3(%arg0: i32) -> (i32, i32) {
    %c0_i32 = arith.constant 0 : i32
    %c0_i32_0 = arith.constant 0 : i32
    return %arg0, %c0_i32 : i32, i32
  }
}

</mosaic_0001>

<bundles_post_ra>
// kernel: tpu_custom_call.1
= control target key start
LH: loop header
LB: loop body
LE: loop exit
PB: predicated region body
PF: predicated region fallthrough
CT: control target
= control target key end

     0   :  { %8 = vsyncpa [#allocation3], 0  ;;  %s352_s0 = inlined_call_operand.hbm [shape: f32[16,48], index: 0, kind: input, shape index: {}]   ;;  %s353_s1 = inlined_call_operand.hbm [shape: f32[48,48], index: 1, kind: input, shape index: {}]   ;;  %s354_s2 = inlined_call_operand.vmem [shape: f32[1,48], index: 2, kind: input, shape index: {}]   ;;  %s355_s3 = inlined_call_operand.hbm [shape: f32[16,48], index: 3, kind: output, shape index: {}]  }
   0x1   :  { %9 = vsyncpa [#allocation6], 0 }
   0x2   :  { %10 = vsyncpa [#allocation4], 0  ;;  %s275_s12 = smov [#allocation2]   ;;  %s203_s16 = scalar_lea.hbm %s352_s0, 256 }
   0x3   :  { %s16_s13 = sshll.u32 %s275_s12, 4  ;;  %p204_p0 = scmp.ne.s32.totalorder %s352_s0, %s203_s16  ;;  %s17_s13 = int_to_ptr.vmem [resolvable:$true] %s16_s13 }
   0x4   :  { %p207_p1 = scmp.lt.u32.totalorder %s203_s16, %s352_s0 }
   0x6   :  { %p209_p2 = pnand %p207_p1, %p204_p0 }
   0x8   :  { %212 = shalt.err (!%p209_p2)
}
   0x9   :  { %s213_s21 = scalar_lea.vmem %s17_s13, 256  ;;  %p218_p4 = scmp.lt.s32.totalorder %s17_s13, %s17_s13 }
   0xa   :  { %p214_p3 = scmp.ne.s32.totalorder %s17_s13, %s213_s21  ;;  %p219_p5 = scmp.lt.s32.totalorder %s213_s21, %s213_s21 }
   0xc   :  { %p220_p6 = por %p219_p5, %p218_p4 }
   0xe   :  { %p221_p7 = pnand %p220_p6, %p214_p3 }
  0x10   :  { %224 = shalt.err (!%p221_p7)
}
  0x11   :  { %s276_s22 = smov 128   ;;  %s277_s23 = smov 8  }
  0x12   :  { %22 = dma.hbm_to_vmem [thread:$0]  %s352_s0, 256, %s17_s13, [#allocation3], %s276_s22, %s276_s22, %s277_s23  }
  0x13   :  { %s278_s26 = smov [#allocation5]   ;;  %s225_s30 = scalar_lea.hbm %s353_s1, 768 }
  0x14   :  { %s28_s27 = sshll.u32 %s278_s26, 4  ;;  %p226_p8 = scmp.ne.s32.totalorder %s353_s1, %s225_s30  ;;  %s29_s27 = int_to_ptr.vmem [resolvable:$true] %s28_s27 }
  0x15   :  { %p229_p9 = scmp.lt.u32.totalorder %s225_s30, %s353_s1 }
  0x17   :  { %p231_p10 = pnand %p229_p9, %p226_p8 }
  0x19   :  { %234 = shalt.err (!%p231_p10)
}
  0x1a   :  { %s235_s8 = scalar_lea.vmem %s29_s27, 768  ;;  %p240_p12 = scmp.lt.s32.totalorder %s29_s27, %s29_s27 }
  0x1b   :  { %p236_p11 = scmp.ne.s32.totalorder %s29_s27, %s235_s8  ;;  %p241_p13 = scmp.lt.s32.totalorder %s235_s8, %s235_s8 }
  0x1d   :  { %p242_p0 = por %p241_p13, %p240_p12 }
  0x1f   :  { %p243_p1 = pnand %p242_p0, %p236_p11 }
  0x21   :  { %246 = shalt.err (!%p243_p1)
}
  0x22   :  { %34 = dma.hbm_to_vmem [thread:$0]  %s353_s1, 768, %s29_s27, [#allocation6], %s276_s22, %s276_s22, %s277_s23  }
  0x23   :  { %269 = dma.done.wait [#allocation3], 256  }
  0x24   :  { %270 = vsyncadd [#allocation3], 4294967040 }
  0x25   :  { %271 = dma.done.wait [#allocation6], 768  }
  0x26   :  { %272 = vsyncadd [#allocation6], 4294966528  ;;  %v45_v0 = vld [vmem:[#allocation5] sm:$0xff]  ;;  %v46_v1 = vld [vmem:[#allocation5 + $0x8] sm:$0xff]  ;;  %vm58_vm0 = vcmask 392192   ;;  %s279_s11 = smov [#allocation7]  }
  0x27   :  { %v47_v2 = vld [vmem:[#allocation5 + $0x10] sm:$0xff]  ;;  %v186_v3 = vpack.c.bf16 %v46_v1, %v45_v0  ;;  %v48_v4 = vld [vmem:[#allocation5 + $0x18] sm:$0xff]  ;;  %v49_v6 = vld [vmem:[#allocation5 + $0x20] sm:$0xff]  ;;  %s147_s12 = sshll.u32 %s279_s11, 4  ;;  %s148_s12 = int_to_ptr.vmem [resolvable:$true] %s147_s12 }
  0x28   :  { %v190_v5 = vpack.c.bf16 %v48_v4, %v47_v2  ;;  %v50_v7 = vld [vmem:[#allocation5 + $0x28] sm:$0xff]  ;;  %v43_v8 = vld [vmem:[#allocation2] sm:$0xff]  ;;  %v44_v10 = vld [vmem:[#allocation2 + $0x8] sm:$0xff]  ;;  %s247_s13 = scalar_lea.vmem %s148_s12, 256  ;;  %p252_p3 = scmp.lt.s32.totalorder %s148_s12, %s148_s12 }
  0x29   :  { %187 = vmatprep.subr.bf16.mxu0 %v186_v3  ;;  %183 = vmatprep.mubr.msk.f32.mxu0 %vm58_vm0, %v43_v8  ;;  %v194_v9 = vpack.c.bf16 %v50_v7, %v49_v6  ;;  %v160_v11 = vld [vmem:[%s354_s2] ss:$0 sm:$0xff]  ;;  %p248_p2 = scmp.ne.s32.totalorder %s148_s12, %s247_s13  ;;  %p253_p4 = scmp.lt.s32.totalorder %s247_s13, %s247_s13 }
  0x2a   :  { %189 = vmatpush3.bf16.msra.mxu0 %v186_v3 }
  0x2b   :  { %191 = vmatprep.subr.bf16.mxu0 %v190_v5  ;;  %p254_p5 = por %p253_p4, %p252_p3 }
  0x2d   :  { %p255_p6 = pnand %p254_p5, %p248_p2 }
  0x2e   :  { %193 = vmatpush3.bf16.msra.mxu0 %v190_v5 }
  0x2f   :  { %195 = vmatprep.subr.bf16.mxu0 %v194_v9 }
  0x32   :  { %197 = vmatpush3.bf16.msra.mxu0 %v194_v9 }
  0x35   :  { %184 = vmatmul.mubr.msk.f32.vlgmr.msra.gmra.mrb[0].mxu0 %vm58_vm0, %v44_v10 }
 0x108   :  { %v185_v12 = vpop.f32.mrb[0].mxu0 }
 0x109   :  { %v137_v13 = vadd.f32 %v185_v12, %v160_v11  ;;  %v131_v14 = vpop.f32.mrb[1].mxu0 }
 0x10a   :  { %v132_v15 = vadd.f32 %v160_v11, %v131_v14 }
 0x10b   :  { %141 = vst.msk [vmem:[#allocation7 + $0x8] sm:$0xff] %vm58_vm0, %v137_v13 }
 0x10c   :  { %140 = vst.msk [vmem:[#allocation7] sm:$0xff] %vm58_vm0, %v132_v15 }
 0x10d   :  { %258 = shalt.err (!%p255_p6)
}
 0x10e   :  { %s259_s15 = scalar_lea.hbm %s355_s3, 256 }
 0x10f   :  { %p260_p7 = scmp.ne.s32.totalorder %s355_s3, %s259_s15  ;;  %p263_p8 = scmp.lt.u32.totalorder %s259_s15, %s355_s3 }
 0x111   :  { %p265_p9 = pnand %p263_p8, %p260_p7 }
 0x113   :  { %268 = shalt.err (!%p265_p9)
}
 0x114   :  { %153 = dma.vmem_to_hbm [thread:$0]  %s148_s12, 256, %s355_s3, [#allocation4], %s276_s22, %s276_s22, %s277_s23  }
 0x115   :  { %273 = dma.done.wait [#allocation4], 256  }
 0x116   :  { %274 = vsyncadd [#allocation4], 4294967040 }
 0x117   :  { %157 = vsyncpa [#allocation3], 1 }
 0x118   :  { %158 = vsyncpa [#allocation6], 1 }
 0x119   :  { %159 = vsyncpa [#allocation4], 1 }

</bundles_post_ra>
